<compile_context>
chip_gen: v7x
topology: tpu7x:2x2x1
jax: 0.10.0
libtpu: 0.0.40
codegen_flags: <defaults>
</compile_context>

<pallas_src>
import math
from functools import partial

import jax
import jax.numpy as jnp
from jax.experimental import pallas as pl
from jax.experimental.pallas import tpu as pltpu


def _flash_kernel(q_ref, k_ref, v_ref, o_ref, m_sc, l_sc, acc_sc,
                  *, causal, sq, sk, tq, tk):
    i = pl.program_id(1)          # query-tile index
    j = pl.program_id(2)          # kv-tile index (reduction axis, innermost)
    offset = sk - sq              # bottom-right causal alignment (flash-attn)

    @pl.when(j == 0)
    def _init():
        m_sc[...] = jnp.full_like(m_sc, -jnp.inf)
        l_sc[...] = jnp.zeros_like(l_sc)
        acc_sc[...] = jnp.zeros_like(acc_sc)

    def compute(apply_mask):
        q = q_ref[0, 0]           # (rep*tq, D); the whole GQA group shares this k/v tile
        k = k_ref[0]              # (tk, D)
        v = v_ref[0]              # (tk, D)

        # QK^T on the MXU, contracting the shared last dim directly (no transposed k
        # tile), f32 accumulation.  softmax_scale is pre-folded into q by the wrapper.
        s = jax.lax.dot_general(q, k, (((1,), (1,)), ((), ())),
                                preferred_element_type=jnp.float32)   # (rep*tq, tk)

        if apply_mask:
            # row-within-query-tile (identical for every GQA head folded into M)
            r = jax.lax.broadcasted_iota(jnp.int32, s.shape, 0) % tq
            col = jax.lax.broadcasted_iota(jnp.int32, s.shape, 1) + j * tk
            s = jnp.where(col <= r + (i * tq + offset), s, -1e30)

        m_prev = m_sc[...]                                            # (rep*tq, 1)
        m_new = jnp.maximum(m_prev, s.max(axis=-1, keepdims=True))
        alpha = jnp.exp(m_prev - m_new)
        x = s - m_new
        if v.dtype == jnp.bfloat16:
            p = jnp.exp(x.astype(jnp.bfloat16))        # bf16 EUP path on v6e/v7x
        else:
            p = jnp.exp(x).astype(v.dtype)             # keep f32 exp otherwise

        l_sc[...] = alpha * l_sc[...] + jnp.sum(p.astype(jnp.float32),
                                                axis=-1, keepdims=True)
        # PV matmul on the MXU with f32 accumulation; v is the stationary operand.
        acc_sc[...] = alpha * acc_sc[...] + jnp.dot(
            p, v, preferred_element_type=jnp.float32)                 # (rep*tq, D)
        m_sc[...] = m_new

    if causal:
        row_last = i * tq + (tq - 1)
        not_fully_masked = (j * tk) <= row_last + offset              # >=1 valid column
        fully_unmasked = (j * tk + (tk - 1)) <= i * tq + offset       # no mask needed

        @pl.when(jnp.logical_and(not_fully_masked, jnp.logical_not(fully_unmasked)))
        def _boundary_tile():
            compute(apply_mask=True)

        @pl.when(fully_unmasked)
        def _interior_tile():
            compute(apply_mask=False)
        # fully-masked kv tiles: compute skipped AND (via the clamped kv index_map)
        # no K/V DMA is issued for them either.
    else:
        compute(apply_mask=False)

    @pl.when(j == pl.num_programs(2) - 1)
    def _epilogue():
        inv_l = pl.reciprocal(l_sc[...], approx=True)                 # EUP, free slot
        o_ref[0, 0] = (acc_sc[...] * inv_l).astype(o_ref.dtype)


def flash_cross_attention(q, kv, softmax_scale=None, causal=False,
                          block_q=512, block_k=512):
    """q: (B, Sq, H, D) bf16/fp16; kv: (B, Sk, 2, H_k, D). Returns (B, Sq, H, D)."""
    B, Sq, H, D = q.shape
    assert kv.shape[0] == B and kv.shape[2] == 2 and kv.shape[4] == D
    Sk, Hk = kv.shape[1], kv.shape[3]
    assert H % Hk == 0 and q.dtype == kv.dtype
    rep = H // Hk
    if causal:
        # Causal with Sq > Sk would leave fully-masked rows (l == 0 -> inf/NaN).
        assert Sq <= Sk, "causal flash_cross_attention requires Sq <= Sk"

    scale = float(softmax_scale) if softmax_scale is not None else 1.0 / math.sqrt(D)

    tq = min(block_q, Sq)
    tk = min(block_k, Sk)
    assert Sq % tq == 0 and Sk % tk == 0
    nq, nj = Sq // tq, Sk // tk
    m_rows = rep * tq
    offset = Sk - Sq

    # Layout passes (one fused XLA copy per tensor):
    #   q  -> (B*Hk, nq, rep*tq, D): the whole GQA group of one query tile is a single
    #         contiguous, sublane/lane-aligned 2-D block, so each K/V tile is DMA'd once
    #         per query tile and reused (MXU-stationary) across all `rep` heads.
    #   kv -> k, v as (B*Hk, Sk, D).
    # softmax_scale is folded into q here (fused into the same copy, single extra
    # rounding) instead of scaling the f32 score tile every kv step in the kernel.
    qs = (q.astype(jnp.float32) * scale).astype(q.dtype)
    qh = (qs.reshape(B, nq, tq, Hk, rep, D)
             .transpose(0, 3, 1, 4, 2, 5)
             .reshape(B * Hk, nq, m_rows, D))
    kh = kv[:, :, 0].transpose(0, 2, 1, 3).reshape(B * Hk, Sk, D)
    vh = kv[:, :, 1].transpose(0, 2, 1, 3).reshape(B * Hk, Sk, D)

    grid = (B * Hk, nq, nj)

    def q_map(g, i, j):
        return (g, i, 0, 0)

    if causal:
        def kv_map(g, i, j):
            # Clamp to the last kv tile with >=1 unmasked column for this query tile:
            # consecutive fully-masked steps return the same block index, so Pallas
            # skips the K/V re-fetch entirely.
            j_last = (i * tq + (tq - 1) + offset) // tk
            return (g, jnp.minimum(j, j_last), 0)
    else:
        def kv_map(g, i, j):
            return (g, j, 0)

    # VMEM: double-buffered q/out/k/v blocks + f32 scratch (m/l lane-padded to 128),
    # ~2x headroom, floored at the 16 MiB compiler default, capped for v7x (64 MiB/TC).
    itemsize = q.dtype.itemsize
    dbuf = 2 * itemsize * (2 * m_rows * D + 2 * tk * D)
    scratch = 4 * (m_rows * D + 2 * m_rows * 128)
    vmem_limit = int(min(max(2 * (dbuf + scratch), 16 * 1024 * 1024),
                         64 * 1024 * 1024))

    out = pl.pallas_call(
        partial(_flash_kernel, causal=causal, sq=Sq, sk=Sk, tq=tq, tk=tk),
        out_shape=jax.ShapeDtypeStruct((B * Hk, nq, m_rows, D), q.dtype),
        grid_spec=pltpu.PrefetchScalarGridSpec(
            num_scalar_prefetch=0,
            grid=grid,
            in_specs=[
                pl.BlockSpec((1, 1, m_rows, D), q_map),
                pl.BlockSpec((1, tk, D), kv_map),
                pl.BlockSpec((1, tk, D), kv_map),
            ],
            out_specs=pl.BlockSpec((1, 1, m_rows, D), q_map),
            scratch_shapes=[
                pltpu.VMEM((m_rows, 1), jnp.float32),   # running max
                pltpu.VMEM((m_rows, 1), jnp.float32),   # running denominator
                pltpu.VMEM((m_rows, D), jnp.float32),   # output accumulator
            ],
        ),
        compiler_params=pltpu.CompilerParams(
            dimension_semantics=("parallel", "parallel", "arbitrary"),
            vmem_limit_bytes=vmem_limit),
    )(qh, kh, vh)

    # Undo the head-group / query-tile folding back to (B, Sq, H, D).
    return (out.reshape(B, Hk, nq, rep, tq, D)
               .transpose(0, 2, 4, 1, 3, 5)
               .reshape(B, Sq, H, D))


def _reference(q, kv, softmax_scale=None, causal=False):
    B, Sq, H, D = q.shape
    Sk, Hk = kv.shape[1], kv.shape[3]
    k = kv[:, :, 0].astype(jnp.float32)
    v = kv[:, :, 1].astype(jnp.float32)
    if Hk != H:
        rep = H // Hk
        k = jnp.repeat(k, rep, axis=2)
        v = jnp.repeat(v, rep, axis=2)
    scale = softmax_scale if softmax_scale is not None else 1.0 / math.sqrt(D)
    s = jnp.einsum('bqhd,bkhd->bhqk', q.astype(jnp.float32), k) * scale
    if causal:
        row = jnp.arange(Sq)[:, None]
        col = jnp.arange(Sk)[None, :]
        s = jnp.where(col <= row + (Sk - Sq), s, -jnp.inf)
    p = jax.nn.softmax(s, axis=-1)
    o = jnp.einsum('bhqk,bkhd->bqhd', p, v)
    return o.astype(q.dtype)


def _check(q, kv, causal, softmax_scale=None, block_q=512, block_k=512, tol=5e-2):
    out = jax.block_until_ready(
        flash_cross_attention(q, kv, softmax_scale=softmax_scale, causal=causal,
                              block_q=block_q, block_k=block_k))
    ref = _reference(q, kv, softmax_scale=softmax_scale, causal=causal)
    err = jnp.max(jnp.abs(out.astype(jnp.float32) - ref.astype(jnp.float32)))
    assert out.shape == q.shape and out.dtype == q.dtype
    assert float(err) < tol, f"max abs error too large: {err}"


if __name__ == "__main__":
    key = jax.random.PRNGKey(0)
    keys = jax.random.split(key, 8)

    # 1) base case: B=2, Sq=Sk=8, H=Hk=4, D=32, non-causal (+ explicit softmax_scale)
    q = jax.random.normal(keys[0], (2, 8, 4, 32), dtype=jnp.float32).astype(jnp.bfloat16)
    kv = jax.random.normal(keys[1], (2, 8, 2, 4, 32), dtype=jnp.float32).astype(jnp.bfloat16)
    _check(q, kv, causal=False)
    _check(q, kv, causal=False, softmax_scale=0.25)

    # 2) GQA (H=4, Hk=2) + causal: the rep=2 head group is folded into the q block
    q = jax.random.normal(keys[2], (2, 8, 4, 32), dtype=jnp.float32).astype(jnp.bfloat16)
    kv = jax.random.normal(keys[3], (2, 8, 2, 2, 32), dtype=jnp.float32).astype(jnp.bfloat16)
    _check(q, kv, causal=True)

    # 3) multi-tile causal (exercises clamped kv index_map, masked-tile skip, interior tiles)
    q = jax.random.normal(keys[4], (1, 256, 2, 64), dtype=jnp.float32).astype(jnp.bfloat16)
    kv = jax.random.normal(keys[5], (1, 256, 2, 1, 64), dtype=jnp.float32).astype(jnp.bfloat16)
    _check(q, kv, causal=True, block_q=128, block_k=128)

    # 4) cross attention with Sq < Sk, bottom-right-aligned causal
    q = jax.random.normal(keys[6], (2, 8, 4, 32), dtype=jnp.float32).astype(jnp.bfloat16)
    kv = jax.random.normal(keys[7], (2, 16, 2, 4, 32), dtype=jnp.float32).astype(jnp.bfloat16)
    _check(q, kv, causal=True)

    print("KERNEL_OK")
</pallas_src>

<mosaic_0001>
module attributes {stable_mosaic.version = 11 : i64} {
  func.func @_flash_kernel(%arg0: i32, %arg1: i32, %arg2: i32, %arg3: memref<1x1x8x32xbf16, #tpu.memory_space<vmem>>, %arg4: memref<1x8x32xbf16, #tpu.memory_space<vmem>>, %arg5: memref<1x8x32xbf16, #tpu.memory_space<vmem>>, %arg6: memref<1x1x8x32xbf16, #tpu.memory_space<vmem>>, %arg7: memref<8x1xf32, #tpu.memory_space<vmem>>, %arg8: memref<8x1xf32, #tpu.memory_space<vmem>>, %arg9: memref<8x32xf32, #tpu.memory_space<vmem>>) attributes {dimension_semantics = [#tpu.dimension_semantics<parallel>, #tpu.dimension_semantics<parallel>, #tpu.dimension_semantics<arbitrary>], iteration_bounds = array<i64: 8, 1, 1>, scalar_prefetch = 0 : i64, scratch_operands = 3 : i64, tpu.core_type = #tpu.core_type<tc>, window_params = [{transform_indices = @transform_0, window_bounds = array<i64: 1, 1, 8, 32>}, {transform_indices = @transform_1, window_bounds = array<i64: 1, 8, 32>}, {transform_indices = @transform_2, window_bounds = array<i64: 1, 8, 32>}, {transform_indices = @transform_3, window_bounds = array<i64: 1, 1, 8, 32>}]} {
    %c0_i32 = arith.constant 0 : i32
    %0 = arith.cmpi eq, %arg2, %c0_i32 : i32
    %1 = arith.extui %0 : i1 to i32
    %c0_i32_0 = arith.constant 0 : i32
    %2 = arith.cmpi ne, %1, %c0_i32_0 : i32
    scf.if %2 {
      %cst_27 = arith.constant 0xFF800000 : f32
      %37 = vector.broadcast %cst_27 : f32 to vector<8x1xf32>
      %c0_28 = arith.constant 0 : index
      %c0_29 = arith.constant 0 : index
      %38 = vector.load %arg7[%c0_28, %c0_29] : memref<8x1xf32, #tpu.memory_space<vmem>>, vector<8x1xf32>
      tpu.vector_store %arg7[%c0_28, %c0_29], %37 {strides = array<i32>} : memref<8x1xf32, #tpu.memory_space<vmem>>, vector<8x1xf32>,
      %cst_30 = arith.constant 0.000000e+00 : f32
      %39 = vector.broadcast %cst_30 : f32 to vector<8x1xf32>
      %c0_31 = arith.constant 0 : index
      %c0_32 = arith.constant 0 : index
      %40 = vector.load %arg8[%c0_31, %c0_32] : memref<8x1xf32, #tpu.memory_space<vmem>>, vector<8x1xf32>
      tpu.vector_store %arg8[%c0_31, %c0_32], %39 {strides = array<i32>} : memref<8x1xf32, #tpu.memory_space<vmem>>, vector<8x1xf32>,
      %cst_33 = arith.constant 0.000000e+00 : f32
      %41 = vector.broadcast %cst_33 : f32 to vector<8x32xf32>
      %c0_34 = arith.constant 0 : index
      %c0_35 = arith.constant 0 : index
      %42 = vector.load %arg9[%c0_34, %c0_35] : memref<8x32xf32, #tpu.memory_space<vmem>>, vector<8x32xf32>
      tpu.vector_store %arg9[%c0_34, %c0_35], %41 {strides = array<i32>} : memref<8x32xf32, #tpu.memory_space<vmem>>, vector<8x32xf32>,
    } else {
    }
    %c0 = arith.constant 0 : index
    %c0_1 = arith.constant 0 : index
    %c0_2 = arith.constant 0 : index
    %c0_3 = arith.constant 0 : index
    %3 = vector.load %arg3[%c0, %c0_1, %c0_2, %c0_3] : memref<1x1x8x32xbf16, #tpu.memory_space<vmem>>, vector<1x1x8x32xbf16>
    %4 = vector.shape_cast %3 : vector<1x1x8x32xbf16> to vector<8x32xbf16>
    %c0_4 = arith.constant 0 : index
    %c0_5 = arith.constant 0 : index
    %c0_6 = arith.constant 0 : index
    %5 = vector.load %arg4[%c0_4, %c0_5, %c0_6] : memref<1x8x32xbf16, #tpu.memory_space<vmem>>, vector<1x8x32xbf16>
    %6 = vector.shape_cast %5 : vector<1x8x32xbf16> to vector<8x32xbf16>
    %c0_7 = arith.constant 0 : index
    %c0_8 = arith.constant 0 : index
    %c0_9 = arith.constant 0 : index
    %7 = vector.load %arg5[%c0_7, %c0_8, %c0_9] : memref<1x8x32xbf16, #tpu.memory_space<vmem>>, vector<1x8x32xbf16>
    %8 = vector.shape_cast %7 : vector<1x8x32xbf16> to vector<8x32xbf16>
    %cst = arith.constant dense<0.000000e+00> : vector<8x8xf32>
    %9 = tpu.matmul %4, %6, %cst {dimension_numbers = #tpu.dot_dimension_numbers<[1], [1], [0], [0], [0, 0, 1, 0], [], []>} : vector<8x32xbf16>, vector<8x32xbf16>, vector<8x8xf32> -> vector<8x8xf32>
    %c0_10 = arith.constant 0 : index
    %c0_11 = arith.constant 0 : index
    %10 = vector.load %arg7[%c0_10, %c0_11] : memref<8x1xf32, #tpu.memory_space<vmem>>, vector<8x1xf32>
    %cst_12 = arith.constant dense<0xFF800000> : vector<8xf32>
    %11 = vector.multi_reduction <maximumf>, %9, %cst_12 [1] : vector<8x8xf32> to vector<8xf32>
    %12 = vector.shape_cast %11 : vector<8xf32> to vector<8x1xf32>
    %13 = arith.maximumf %10, %12 : vector<8x1xf32>
    %14 = arith.subf %10, %13 : vector<8x1xf32>
    %15 = math.exp %14 : vector<8x1xf32>
    %16 = vector.broadcast %13 : vector<8x1xf32> to vector<8x8xf32>
    %17 = arith.subf %9, %16 : vector<8x8xf32>
    %18 = arith.truncf %17 : vector<8x8xf32> to vector<8x8xbf16>
    %19 = math.exp %18 : vector<8x8xbf16>
    %c0_13 = arith.constant 0 : index
    %c0_14 = arith.constant 0 : index
    %20 = vector.load %arg8[%c0_13, %c0_14] : memref<8x1xf32, #tpu.memory_space<vmem>>, vector<8x1xf32>
    %21 = arith.mulf %15, %20 : vector<8x1xf32>
    %22 = arith.extf %19 : vector<8x8xbf16> to vector<8x8xf32>
    %cst_15 = arith.constant dense<0.000000e+00> : vector<8xf32>
    %23 = vector.multi_reduction <add>, %22, %cst_15 [1] : vector<8x8xf32> to vector<8xf32>
    %24 = vector.shape_cast %23 : vector<8xf32> to vector<8x1xf32>
    %25 = arith.addf %21, %24 : vector<8x1xf32>
    %c0_16 = arith.constant 0 : index
    %c0_17 = arith.constant 0 : index
    %26 = vector.load %arg8[%c0_16, %c0_17] : memref<8x1xf32, #tpu.memory_space<vmem>>, vector<8x1xf32>
    tpu.vector_store %arg8[%c0_16, %c0_17], %25 {strides = array<i32>} : memref<8x1xf32, #tpu.memory_space<vmem>>, vector<8x1xf32>,
    %c0_18 = arith.constant 0 : index
    %c0_19 = arith.constant 0 : index
    %27 = vector.load %arg9[%c0_18, %c0_19] : memref<8x32xf32, #tpu.memory_space<vmem>>, vector<8x32xf32>
    %28 = vector.broadcast %15 : vector<8x1xf32> to vector<8x32xf32>
    %29 = arith.mulf %28, %27 : vector<8x32xf32>
    %cst_20 = arith.constant dense<0.000000e+00> : vector<8x32xf32>
    %30 = tpu.matmul %19, %8, %cst_20 {dimension_numbers = #tpu.dot_dimension_numbers<[1], [0], [0], [1], [0, 0, 1, 1], [], []>} : vector<8x8xbf16>, vector<8x32xbf16>, vector<8x32xf32> -> vector<8x32xf32>
    %31 = arith.addf %29, %30 : vector<8x32xf32>
    %c0_21 = arith.constant 0 : index
    %c0_22 = arith.constant 0 : index
    %32 = vector.load %arg9[%c0_21, %c0_22] : memref<8x32xf32, #tpu.memory_space<vmem>>, vector<8x32xf32>
    tpu.vector_store %arg9[%c0_21, %c0_22], %31 {strides = array<i32>} : memref<8x32xf32, #tpu.memory_space<vmem>>, vector<8x32xf32>,
    %c0_23 = arith.constant 0 : index
    %c0_24 = arith.constant 0 : index
    %33 = vector.load %arg7[%c0_23, %c0_24] : memref<8x1xf32, #tpu.memory_space<vmem>>, vector<8x1xf32>
    tpu.vector_store %arg7[%c0_23, %c0_24], %13 {strides = array<i32>} : memref<8x1xf32, #tpu.memory_space<vmem>>, vector<8x1xf32>,
    %c0_i32_25 = arith.constant 0 : i32
    %34 = arith.cmpi eq, %arg2, %c0_i32_25 : i32
    %35 = arith.extui %34 : i1 to i32
    %c0_i32_26 = arith.constant 0 : i32
    %36 = arith.cmpi ne, %35, %c0_i32_26 : i32
    scf.if %36 {
      %c0_27 = arith.constant 0 : index
      %c0_28 = arith.constant 0 : index
      %37 = vector.load %arg8[%c0_27, %c0_28] : memref<8x1xf32, #tpu.memory_space<vmem>>, vector<8x1xf32>
      %38 = tpu.reciprocal %37 {approx = true} : vector<8x1xf32> -> vector<8x1xf32>
      %c0_29 = arith.constant 0 : index
      %c0_30 = arith.constant 0 : index
      %39 = vector.load %arg9[%c0_29, %c0_30] : memref<8x32xf32, #tpu.memory_space<vmem>>, vector<8x32xf32>
      %40 = vector.broadcast %38 : vector<8x1xf32> to vector<8x32xf32>
      %41 = arith.mulf %39, %40 : vector<8x32xf32>
      %42 = arith.truncf %41 : vector<8x32xf32> to vector<8x32xbf16>
      %c0_31 = arith.constant 0 : index
      %c0_32 = arith.constant 0 : index
      %c0_33 = arith.constant 0 : index
      %c0_34 = arith.constant 0 : index
      %43 = vector.load %arg6[%c0_31, %c0_32, %c0_33, %c0_34] : memref<1x1x8x32xbf16, #tpu.memory_space<vmem>>, vector<1x1x8x32xbf16>
      %44 = vector.shape_cast %43 : vector<1x1x8x32xbf16> to vector<8x32xbf16>
      %45 = vector.shape_cast %42 : vector<8x32xbf16> to vector<1x1x8x32xbf16>
      tpu.vector_store %arg6[%c0_31, %c0_32, %c0_33, %c0_34], %45 {strides = array<i32>} : memref<1x1x8x32xbf16, #tpu.memory_space<vmem>>, vector<1x1x8x32xbf16>,
    } else {
    }
    return
  }
  func.func @transform_0(%arg0: i32, %arg1: i32, %arg2: i32) -> (i32, i32, i32, i32) {
    %c0_i32 = arith.constant 0 : i32
    %c0_i32_0 = arith.constant 0 : i32
    %c0_i32_1 = arith.constant 0 : i32
    return %arg0, %arg1, %c0_i32, %c0_i32_0 : i32, i32, i32, i32
  }
  func.func @transform_1(%arg0: i32, %arg1: i32, %arg2: i32) -> (i32, i32, i32) {
    %c0_i32 = arith.constant 0 : i32
    %c0_i32_0 = arith.constant 0 : i32
    return %arg0, %arg2, %c0_i32 : i32, i32, i32
  }
  func.func @transform_2(%arg0: i32, %arg1: i32, %arg2: i32) -> (i32, i32, i32) {
    %c0_i32 = arith.constant 0 : i32
    %c0_i32_0 = arith.constant 0 : i32
    return %arg0, %arg2, %c0_i32 : i32, i32, i32
  }
  func.func @transform_3(%arg0: i32, %arg1: i32, %arg2: i32) -> (i32, i32, i32, i32) {
    %c0_i32 = arith.constant 0 : i32
    %c0_i32_0 = arith.constant 0 : i32
    %c0_i32_1 = arith.constant 0 : i32
    return %arg0, %arg1, %c0_i32, %c0_i32_0 : i32, i32, i32, i32
  }
}

</mosaic_0001>

<bundles_post_ra>
// kernel: tpu_custom_call.1
= control target key start
LH: loop header
LB: loop body
LE: loop exit
PB: predicated region body
PF: predicated region fallthrough
CT: control target
= control target key end

     0   :  { %s1190_s0 = inlined_call_operand.hbm [shape: bf16[8,1,8,32], index: 0, kind: input, shape index: {}]   ;;  %s1191_s1 = inlined_call_operand.hbm [shape: bf16[8,8,32], index: 1, kind: input, shape index: {}]   ;;  %s1192_s2 = inlined_call_operand.hbm [shape: bf16[8,8,32], index: 2, kind: input, shape index: {}]   ;;  %s1193_s3 = inlined_call_operand.hbm [shape: bf16[8,1,8,32], index: 3, kind: output, shape index: {}]  }
   0x1   :  { %1199 = sst [smem:[#allocation18_spill]] %s1191_s1 }
   0x2   :  { %8 = vsyncpa [#allocation6], 0 }
   0x3   :  { %10 = vsyncpa [#allocation6 + $0x1], 0 }
   0x4   :  { %11 = vsyncpa [#allocation9], 0 }
   0x5   :  { %13 = vsyncpa [#allocation9 + $0x1], 0 }
   0x6   :  { %14 = vsyncpa [#allocation7], 0 }
   0x7   :  { %16 = vsyncpa [#allocation7 + $0x1], 0  ;;  %s917_s12 = smov 0   ;;  %s919_s13 = smov 0  }
   0x8   :  { %s921_s14 = smov 0   ;;  %s923_s15 = smov 0  }
   0x9   :  { %s925_s16 = smov 0   ;;  %s927_s17 = smov 0  }
   0xa LB: > { %1200 = sst [smem:[#allocation15_spill]] %s883_s16  ;;  %s948_s18 = sadd.s32 4294967295, %s887_s17   ;;  %s887_s17 = sphi %s927_s17, %s22_s17   ;;  %s883_s16 = sphi %s925_s16, %s1220_s16   ;;  %s879_s15 = sphi %s923_s15, %s1219_s15   ;;  %s875_s14 = sphi %s921_s14, %s1223_s14   ;;  %s871_s13 = sphi %s919_s13, %s1222_s13   ;;  %s867_s12 = sphi %s917_s12, %s1221_s12  }
   0xb   : > { %s591_s19 = sadd.s32 4294967294, %s887_s17   ;;  %s41_s20 = sadd.s32 1, %s883_s16 }
   0xc   : > { %s50_s21 = sadd.s32 1, %s875_s14  ;;  %p43_p0 = scmp.ge.s32.totalorder %s41_s20, 8 }
   0xd   : > { %p57_p1 = scmp.ne.s32.totalorder %s875_s14, %s871_s13  ;;  %p58_p2 = scmp.eq.s32.totalorder %s887_s17, 0 }
   0xe   : > { %p63_p3 = scmp.ne.s32.totalorder %s871_s13, %s867_s12  ;;  %s1225_s20 = smov (%p43_p0, %s41_s20), 0 }
   0xf   : > { %1201 = sst [smem:[#allocation16_spill]] %s1225_s20  ;;  %p960_p4 = por %p58_p2, %p57_p1 }
  0x10   : > { %p64_p5 = scmp.eq.s32.totalorder %s948_s18, 0  ;;  %s45_s23 = ssub.s32 %s883_s16, %s1225_s20 }
  0x11   : > { %p145_p6 = scmp.eq.s32.totalorder %s948_s18, 7  ;;  %p48_p7 = scmp.eq.s32.totalorder %s45_s23, 0 }
  0x12   : > { %p968_p8 = por %p64_p5, %p63_p3  ;;  %p151_p10 = scmp.eq.s32.totalorder %s591_s19, 7 }
  0x13   : > { %p972_p9 = por %p145_p6, %p57_p1  ;;  %p649_p12 = scmp.lt.s32.totalorder %s887_s17, 8 }
  0x14   : > { %s1203_s24 = scalar_select %p968_p8, 1, 0 }
  0x15   : > { %s1204_s25 = scalar_select %p972_p9, 1, 0 }
  0x16   : > { %s977_s26 = scalar_select %p48_p7, %s875_s14, %s50_s21  }
  0x17   : > { %p979_p11 = por %p151_p10, %p63_p3  ;;  %s171_s28 = sand.u32 1, %s875_s14  }
  0x18   : > { %1205 = sst [smem:[#allocation17_spill]] %s977_s26  ;;  %s987_s29 = sshll.u32 %s171_s28, 2 }
  0x19   : > { %s1206_s27 = scalar_select %p979_p11, 1, 0 }
  0x1a   : > { %s990_s30 = sshll.u32 %s883_s16, 6  ;;  %p994_p13 = pnand %p649_p12, %p960_p4 }
  0x1b   : > { %s190_s5 = sand.u32 1, %s887_s17   ;;  %s1208_s1 = sld [smem:[#allocation18_spill]] }
  0x1c   : > { %s1207_s4 = scalar_select %p994_p13, 1, 0 }
  0x1d   : > { %s194_s9 = scalar_lea.vmem [#allocation8], %s987_s29  ;;  %s1010_s11 = scalar_lea.sflag [#allocation9], %s190_s5 }
  0x1e   : > { %s202_s10 = sshll.u32 %s194_s9, 4  ;;  %p1016_p3 = pneg %p994_p13  ;;  %s1007_s10 = int_to_ptr.vmem [resolvable:$true] %s202_s10 }
  0x21   : > { %s1003_s8 = scalar_lea.hbm %s1208_s1, %s990_s30  ;;  %s716_s6 = scalar_lea.hbm %s1208_s1, 512 }
  0x22   : > { %s711_s19 = scalar_lea.hbm %s1003_s8, 64  ;;  %p717_p6 = scmp.lt.u32.totalorder %s1003_s8, %s1208_s1 }
  0x23   : > { %p712_p2 = scmp.ne.s32.totalorder %s1003_s8, %s711_s19  ;;  %p718_p7 = scmp.lt.u32.totalorder %s716_s6, %s711_s19 }
  0x24   : > { %p720_p12 = scmp.lt.u32.totalorder %s711_s19, %s1003_s8 }
  0x25   : > { %p714_p4 = pnand %p1016_p3, %p712_p2  ;;  %p719_p10 = por %p718_p7, %p717_p6 }
  0x27   : > { %p715_p5 = pneg %p714_p4  ;;  %p721_p0 = por %p720_p12, %p719_p10 }
  0x29   : > { %p722_p1 = pnand %p721_p0, %p715_p5 }
  0x2b   : > { %725 = shalt.err (!%p722_p1)
}
  0x2c   : > { %s726_s5 = scalar_lea.vmem %s1007_s10, 64  ;;  %s889_s22 = smov [#allocation8]  }
  0x2d   : > { %p727_p2 = scmp.ne.s32.totalorder %s1007_s10, %s726_s5  ;;  %s731_s23 = sshll.u32 %s889_s22, 4  ;;  %s732_s23 = int_to_ptr.vmem [resolvable:$false] %s731_s23 }
  0x2e   : > { %s733_s7 = scalar_lea.vmem %s732_s23, 128  ;;  %p734_p9 = scmp.lt.s32.totalorder %s1007_s10, %s732_s23 }
  0x2f   : > { %p729_p4 = pnand %p727_p2, %p1016_p3  ;;  %p735_p8 = scmp.lt.s32.totalorder %s733_s7, %s726_s5 }
  0x31   : > { %p730_p11 = pneg %p729_p4  ;;  %p736_p6 = por %p735_p8, %p734_p9 }
  0x33   : > { %p737_p7 = pnand %p736_p6, %p730_p11 }
  0x35   : > { %740 = shalt.err (!%p737_p7)
}
  0x36   : > { %641 = dma.hbm_to_vmem [thread:$0]  (!%p994_p13), %s1003_s8, 64, %s1007_s10, %s1010_s11  }
  0x37   : > { %p1210_p0 = scmp.lt.s32.totalorder %s887_s17, 9  ;;  %p1211_p1 = scmp.ge.s32.totalorder %s887_s17, 1 }
  0x38   : > { %s1052_s5 = scalar_lea.hbm %s1190_s0, %s990_s30  ;;  %s175_s22 = scalar_lea.vmem [#allocation5], %s987_s29 }
  0x39   : > { %p1044_p5 = pnand %p1211_p1, %p1210_p0  ;;  %s183_s23 = sshll.u32 %s175_s22, 4  ;;  %s1055_s23 = int_to_ptr.vmem [resolvable:$true] %s183_s23 }
  0x3a   : > { %s1061_s7 = scalar_lea.hbm %s1192_s2, %s990_s30  ;;  %s172_s1 = scalar_lea.sflag [#allocation6], %s171_s28 }
  0x3b   : > { %s1212_s19 = scalar_select %p1044_p5, 1, 0 }
  0x3c   : > { %s741_s20 = scalar_lea.hbm %s1052_s5, 64  ;;  %s746_s16 = scalar_lea.hbm %s1190_s0, 512 }
  0x3d   : > { %p742_p8 = scmp.ne.s32.totalorder %s1052_s5, %s741_s20  ;;  %p747_p10 = scmp.lt.u32.totalorder %s1052_s5, %s1190_s0 }
  0x3e   : > { %p748_p12 = scmp.lt.u32.totalorder %s746_s16, %s741_s20  ;;  %p750_p4 = scmp.lt.u32.totalorder %s741_s20, %s1052_s5 }
  0x3f   : > { %p744_p9 = pnand %p742_p8, %p1016_p3 }
  0x40   : > { %p749_p2 = por %p748_p12, %p747_p10 }
  0x41   : > { %p745_p11 = pneg %p744_p9 }
  0x42   : > { %p751_p6 = por %p750_p4, %p749_p2 }
  0x44   : > { %p752_p7 = pnand %p751_p6, %p745_p11 }
  0x46   : > { %755 = shalt.err (!%p752_p7)
}
  0x47   : > { %s756_s28 = scalar_lea.vmem %s1055_s23, 64  ;;  %s890_s30 = smov [#allocation5]  }
  0x48   : > { %p757_p0 = scmp.ne.s32.totalorder %s1055_s23, %s756_s28  ;;  %s761_s8 = sshll.u32 %s890_s30, 4  ;;  %s762_s8 = int_to_ptr.vmem [resolvable:$false] %s761_s8 }
  0x49   : > { %s763_s26 = scalar_lea.vmem %s762_s8, 128  ;;  %p764_p9 = scmp.lt.s32.totalorder %s1055_s23, %s762_s8 }
  0x4a   : > { %p759_p1 = pnand %p757_p0, %p1016_p3  ;;  %p765_p5 = scmp.lt.s32.totalorder %s763_s26, %s756_s28 }
  0x4c   : > { %p760_p8 = pneg %p759_p1  ;;  %p766_p10 = por %p765_p5, %p764_p9 }
  0x4e   : > { %p767_p12 = pnand %p766_p10, %p760_p8 }
  0x50   : > { %770 = shalt.err (!%p767_p12)
}
  0x51   : > { %638 = dma.hbm_to_vmem [thread:$0]  (!%p994_p13), %s1052_s5, 64, %s1055_s23, %s172_s1  }
  0x52   : > { %s213_s16 = scalar_lea.vmem [#allocation10], %s987_s29  ;;  %s771_s10 = scalar_lea.hbm %s1061_s7, 64 }
  0x53   : > { %s221_s20 = sshll.u32 %s213_s16, 4  ;;  %p772_p11 = scmp.ne.s32.totalorder %s1061_s7, %s771_s10  ;;  %s222_s20 = int_to_ptr.vmem [resolvable:$true] %s221_s20 }
  0x54   : > { %s776_s22 = scalar_lea.hbm %s1192_s2, 512  ;;  %p777_p4 = scmp.lt.u32.totalorder %s1061_s7, %s1192_s2 }
  0x55   : > { %p774_p5 = pnand %p772_p11, %p1016_p3  ;;  %p778_p6 = scmp.lt.u32.totalorder %s776_s22, %s771_s10 }
  0x56   : > { %p780_p0 = scmp.lt.u32.totalorder %s771_s10, %s1061_s7 }
  0x57   : > { %p775_p2 = pneg %p774_p5  ;;  %p779_p7 = por %p778_p6, %p777_p4 }
  0x59   : > { %p781_p1 = por %p780_p0, %p779_p7 }
  0x5b   : > { %p782_p8 = pnand %p781_p1, %p775_p2 }
  0x5d   : > { %785 = shalt.err (!%p782_p8)
}
  0x5e   : > { %s786_s1 = scalar_lea.vmem %s222_s20, 64  ;;  %s891_s29 = smov [#allocation10]  }
  0x5f   : > { %p787_p9 = scmp.ne.s32.totalorder %s222_s20, %s786_s1  ;;  %s791_s5 = sshll.u32 %s891_s29, 4  ;;  %s792_s5 = int_to_ptr.vmem [resolvable:$false] %s791_s5 }
  0x60   : > { %s793_s23 = scalar_lea.vmem %s792_s5, 128  ;;  %p794_p11 = scmp.lt.s32.totalorder %s222_s20, %s792_s5 }
  0x61   : > { %p789_p10 = pnand %p787_p9, %p1016_p3  ;;  %p795_p5 = scmp.lt.s32.totalorder %s793_s23, %s786_s1 }
  0x63   : > { %p790_p12 = pneg %p789_p10  ;;  %p796_p13 = por %p795_p5, %p794_p11 }
  0x65   : > { %p797_p4 = pnand %p796_p13, %p790_p12 }
  0x67   : > { %800 = shalt.err (!%p797_p4)
}
  0x68   : > { %p1213_p6 = scmp.ne.s32.totalorder %s1207_s4, 0  ;;  %p1214_p2 = scmp.ne.s32.totalorder %s1212_s19, 0 }
  0x69   : > { %s1108_s21 = sand.u32 (!%p1214_p2), 1, %s871_s13   ;;  %p1215_p13 = scmp.ne.s32.totalorder (!%p1214_p2), %s1203_s24, 0 }
  0x6a   : > { %644 = dma.hbm_to_vmem [thread:$0]  (!%p1213_p6), %s1061_s7, 64, %s222_s20, %s1010_s11  }
  0x6b   : > { %230 = sbr.rel (%p1214_p2) target bundleno = 943 (0x3af), region = 32  ;;  %s1111_s8 = sshll.u32 (!%p1214_p2), %s1108_s21, 2 }
  0x6c   : > { %s233_s26 = scalar_lea.sflag (!%p1214_p2), [#allocation6], %s1108_s21  ;;  %s236_s16 = scalar_lea.vmem (!%p1214_p2), [#allocation5], %s1111_s8 }
  0x72   : > { %854 = dma.done.wait (%p1215_p13), %s233_s26, 64  }
  0x73   : > { %856 = vsyncadd (%p1215_p13), %s233_s26, 4294967232  ;;  %s241_s4 = sand.u32 1, %s948_s18   ;;  %s245_s19 = scalar_lea.vmem [#allocation8], %s1111_s8 }
  0x74   : > { %s242_s11 = scalar_lea.sflag [#allocation9], %s241_s4 }
  0x75   : > { %858 = dma.done.wait (%p1215_p13), %s242_s11, 128  }
  0x76   : > { %860 = vsyncadd (%p1215_p13), %s242_s11, 4294967168  ;;  %vm295_vm0 = vcmask 261120   ;;  %v892_v0 = vmov 0.0   ;;  %vm893_vm1 = vmmov 0   ;;  %v298_v1 = vld [vmem:[%s245_s19] sm:$0xf] }
  0x77   : > { %615 = vmatprep.subr.bf16.mxu0 %v892_v0  ;;  %296 = vst.msk [vmem:[#allocation4] sm:$0xff] %vm295_vm0, %v892_v0  ;;  %617 = vmatprep.mubr.msk.bf16.mxu0 %vm893_vm1, %v892_v0  ;;  %v305_v2 = vsel %vm295_vm0, %v298_v1, 0  ;;  %v297_v3 = vld [vmem:[%s236_s16] sm:$0xf]  ;;  %vm292_vm2 = vcmask 7168   ;;  %v894_v4 = vmov -inf  }
  0x78   : > { %621 = vmatprep.subr.bf16.mxu1 %v892_v0  ;;  %623 = vmatprep.mubr.msk.bf16.mxu1 %vm893_vm1, %v892_v0  ;;  %293 = vst.msk [vmem:[#allocation2] sm:$0xff] %vm292_vm2, %v894_v4  ;;  %294 = vst.msk [vmem:[#allocation3] sm:$0xff] %vm292_vm2, %v892_v0  ;;  %vm348_vm3 = vcmask 64512   ;;  %v895_v10 = vmov 0   ;;  %vm385_vm4 = vcmask 1043456   ;;  %s254_s18 = scalar_lea.vmem [#allocation10], %s1111_s8 }
  0x79   : > { %616 = vmatpush3.bf16.xpose.msra.mxu0 %v305_v2  ;;  %703 = vset.pattern.permute.xlu0 %v895_v10  ;;  %v299_v15 = vld [vmem:[%s254_s18] sm:$0xf]  ;;  %s608_s24 = sshll.u32 %s879_s15, 6  ;;  %s286_s7 = scalar_lea.vmem [#allocation11], %s1111_s8  ;;  %vm445_vm5 = vcmask 257024  }
  0x7a   : > { %704 = vset.pattern.permute.xlu1 %v895_v10  ;;  %v387_v16 = vsel %vm385_vm4, %v299_v15, 0  ;;  %s462_s20 = sshll.u32 %s286_s7, 4  ;;  %s1142_s9 = scalar_lea.hbm %s1193_s3, %s608_s24  ;;  %s1144_s20 = int_to_ptr.vmem [resolvable:$true] %s462_s20 }
  0x7b   : > { %622 = vmatpush3.bf16.msra.mxu1 %v387_v16  ;;  %s448_s22 = scalar_lea.sflag [#allocation7], %s1108_s21  ;;  %s801_s28 = scalar_lea.vmem %s1144_s20, 64 }
  0x7c   : > { %p802_p3 = scmp.ne.s32.totalorder %s1144_s20, %s801_s28  ;;  %p1216_p7 = scmp.ne.s32.totalorder %s1204_s25, 0 }
  0x7d   : > { %s896_s15 = smov [#allocation11]  }
  0x7e   : > { %v375_v32 = vld [vmem:[#allocation4] sm:$0xff]  ;;  %p803_p0 = pnand %p802_p3, %p1216_p7  ;;  %s805_s30 = sshll.u32 %s896_s15, 4  ;;  %s806_s30 = int_to_ptr.vmem [resolvable:$false] %s805_s30 }
  0x7f   : > { %v347_v11 = vld [vmem:[#allocation2] sm:$0xff]  ;;  %v366_v26 = vld [vmem:[#allocation3] sm:$0xff]  ;;  %s807_s1 = scalar_lea.vmem %s806_s30, 128  ;;  %p808_p8 = scmp.lt.s32.totalorder %s1144_s20, %s806_s30 }
  0x80   : > { %618 = vmatmul.mubr.msk.bf16.vlgmr.msra.gmra.mrb[0].mxu0 %vm295_vm0, %v297_v3  ;;  %p804_p1 = pneg %p803_p0  ;;  %p809_p9 = scmp.lt.s32.totalorder %s807_s1, %s801_s28 }
  0x82   : > { %p810_p10 = por %p809_p9, %p808_p8 }
  0x84   : > { %p811_p12 = pnand %p810_p10, %p804_p1 }
 0x153   : > { %v341_v5 = vpop.f32.mrb[0].mxu0 }
 0x154   : > { %v619_v6 = vpop.f32.mrb[1].mxu0  ;;  %v349_v7 = vsel %vm348_vm3, %v341_v5, -inf }
 0x155   : > { %350 = vmax.xlane.f32.xlu0 %v349_v7  ;;  %v344_v8 = vpop.f32.mrb[2].mxu0 }
 0x156   : > { %v620_v9 = vpop.f32.mrb[3].mxu0 }
 0x1e2   : > { %v351_v12 = vpop.xlane.xlu0 %350 }
 0x1e3   : > { %v352_v13 = vmax.f32 %v347_v11, %v351_v12 }
 0x1e5   : > { %v353_v14 = vsub.f32 %v347_v11, %v352_v13  ;;  %431 = vst.msk [vmem:[#allocation2] sm:$0xff] %vm292_vm2, %v352_v13  ;;  %358 = vperm.xlu0 %703, %v352_v13  }
 0x1e7   : > { %v354_v24 = vmul.f32 1.442695, %v353_v14 }
 0x264   : > { %v359_v17 = vpop.permute.xlu0 %358 }
 0x265   : > { %v361_v18 = vsub.f32 %v341_v5, %v359_v17 }
 0x267   : > { %v362_v19 = vpack.c.bf16 %v361_v18, %v361_v18 }
 0x269   : > { %v364_v20 = vmul.bf16 1069105081, %v362_v19 }
 0x26b   : > { %705 = vpow.bf16 %v364_v20 }
 0x26c   : > { %707 = vpow2.f32 %v354_v24 }
 0x276   : > { %v706_v21 = vpop.eup %705 }
 0x277   : > { %624 = vmatmul.mubr.msk.bf16.vlgmr.msra.gmra.mrb[0].mxu1 %vm348_vm3, %v706_v21  ;;  %v368_v22 = vunpack.c.l.bf16 %v706_v21  ;;  %v708_v25 = vpop.eup %707 }
 0x278   : > { %v367_v27 = vmul.f32 %v708_v25, %v366_v26 }
 0x279   : > { %v369_v23 = vsel %vm348_vm3, %v368_v22, 0.0 }
 0x27a   : > { %370 = vadd.xlane.f32.xlu1 %v369_v23 }
 0x28b   : > { %378 = vperm.xlu1 %704, %v708_v25  }
 0x307   : > { %v371_v28 = vpop.xlane.xlu1 %370 }
 0x308   : > { %v372_v29 = vadd.f32 %v371_v28, %v367_v27 }
 0x30a   : > { %374 = vst.msk [vmem:[#allocation3] sm:$0xff] %vm292_vm2, %v372_v29 }
 0x30b   : > { %v379_v33 = vpop.permute.xlu1 %378 }
 0x30c   : > { %v381_v34 = vmul.f32 %v379_v33, %v375_v32 }
 0x311   : > { %v435_v30 = vld [vmem:[#allocation3] sm:$0xff] }
 0x312   : > { %709 = vrcp.f32 %v435_v30 }
 0x31c   : > { %v710_v31 = vpop.eup %709 }
 0x31d   : > { %440 = vperm.xlu1 %704, %v710_v31  }
 0x34a   : > { %v423_v35 = vpop.f32.mrb[0].mxu1 }
 0x34b   : > { %v429_v36 = vadd.f32 %v423_v35, %v381_v34  ;;  %v625_v37 = vpop.f32.mrb[1].mxu1 }
 0x34c   : > { %v426_v38 = vpop.f32.mrb[2].mxu1 }
 0x34d   : > { %430 = vst.msk [vmem:[#allocation4] sm:$0xff] %vm295_vm0, %v429_v36  ;;  %v626_v39 = vpop.f32.mrb[3].mxu1 }
 0x354   : > { %v437_v40 = vld [vmem:[#allocation4] sm:$0xff] }
 0x39c   : > { %v441_v41 = vpop.permute.xlu1 %440 }
 0x39d   : > { %v443_v42 = vmul.f32 %v441_v41, %v437_v40 }
 0x39f   : > { %v444_v43 = vpack.c.bf16 %v443_v42, %v443_v42 }
 0x3a1   : > { %446 = vst.msk [vmem:[%s286_s7] sm:$0xf] %vm445_vm5, %v444_v43 }
 0x3a2   : > { %814 = shalt.err (!%p811_p12)
}
 0x3a3   : > { %s815_s29 = scalar_lea.hbm %s1142_s9, 64  ;;  %s819_s21 = scalar_lea.hbm %s1193_s3, 512 }
 0x3a4   : > { %p816_p11 = scmp.ne.s32.totalorder %s1142_s9, %s815_s29  ;;  %p820_p6 = scmp.lt.u32.totalorder %s1142_s9, %s1193_s3 }
 0x3a5   : > { %p821_p2 = scmp.lt.u32.totalorder %s819_s21, %s815_s29  ;;  %p823_p3 = scmp.lt.u32.totalorder %s815_s29, %s1142_s9 }
 0x3a6   : > { %p817_p5 = pnand %p816_p11, %p1216_p7 }
 0x3a7   : > { %p822_p13 = por %p821_p2, %p820_p6 }
 0x3a8   : > { %p818_p4 = pneg %p817_p5 }
 0x3a9   : > { %p824_p0 = por %p823_p3, %p822_p13 }
 0x3ab   : > { %p825_p1 = pnand %p824_p0, %p818_p4 }
 0x3ad   : > { %828 = shalt.err (!%p825_p1)
}
 0x3ae   : > { %633 = dma.vmem_to_hbm [thread:$0]  (%p1216_p7), %s1144_s20, 64, %s1142_s9, %s448_s22  }
 0x3af PF: > { %p650_p8 = scmp.ge.s32.totalorder %s887_s17, 2  ;;  %s474_s16 = sand.u32 1, %s867_s12  }
 0x3b0   : > { %p1217_p9 = scmp.ne.s32.totalorder %s1206_s27, 0  ;;  %s475_s4 = scalar_lea.sflag [#allocation7], %s474_s16 }
 0x3b2   : > { %p646_p10 = pnand %p650_p8, %p1217_p9 }
 0x3b4   : > { %862 = dma.done.wait (!%p646_p10), %s475_s4, 64  }
 0x3b5   : > { %864 = vsyncadd (!%p646_p10), %s475_s4, 4294967232  ;;  %s22_s17 = sadd.s32 1, %s887_s17   ;;  %s1218_s25 = sld [smem:[#allocation17_spill]] }
 0x3b6   : > { %p19_p12 = scmp.ge.s32.totalorder %s22_s17, 10   ;;  %s1219_s15 = sld [smem:[#allocation15_spill]] }
 0x3b7   : > { %s1220_s16 = sld [smem:[#allocation16_spill]]  ;;  %s1221_s12 = smov %s871_s13 }
 0x3b8   : > { %s1222_s13 = smov %s875_s14  ;;  %21 = sbr.rel (!%p19_p12) target bundleno = 10 (0xa), region = 109 }
 0x3bb   : > { %s1223_s14 = smov %s1218_s25 }
 0x3bf   :  { %480 = vsyncpa [#allocation6], 1 }
 0x3c0   :  { %482 = vsyncpa [#allocation6 + $0x1], 1 }
 0x3c1   :  { %483 = vsyncpa [#allocation9], 1 }
 0x3c2   :  { %485 = vsyncpa [#allocation9 + $0x1], 1 }
 0x3c3   :  { %486 = vsyncpa [#allocation7], 1 }
 0x3c4   :  { %488 = vsyncpa [#allocation7 + $0x1], 1 }

</bundles_post_ra>
